<compile_context>
chip_gen: v5e
topology: v5e:2x2
jax: 0.10.0
libtpu: 0.0.40
codegen_flags: <defaults>
</compile_context>

<pallas_src>
import jax
import jax.numpy as jnp
from jax.experimental import pallas as pl
from jax.experimental.pallas import tpu as pltpu

H1 = 111        # hidden width of l1 (fixed by the module)
H1_PAD = 128    # padded to one full lane register (exact: pad lanes are zero)


# ---------------------------------------------------------------------------
# Kernel: fused  out = ((x @ W1^T + b1) * w2).sum(-1) + b2   on one batch tile
# ---------------------------------------------------------------------------
def linear_probe_kernel(x_ref, w1_ref, b1_ref, w2_ref, b2_ref, o_ref):
    # l1: (TB, S) @ (S, 128) + b1 -> (TB, 128)   (MXU, f32 accumulate)
    h = jnp.dot(x_ref[...], w1_ref[...],
                preferred_element_type=jnp.float32) + b1_ref[...]
    # l2: row-vector weight (1, 128); VPU multiply + XLU lane reduce -> (TB, 1)
    o = jnp.sum(h * w2_ref[...], axis=-1, keepdims=True) + b2_ref[...]
    o_ref[...] = o.astype(o_ref.dtype)          # narrow (TB, 1) store, real width


# ---------------------------------------------------------------------------
# Parameter init (deterministic, PyTorch nn.Linear style U(-1/sqrt(fan_in), .))
# ---------------------------------------------------------------------------
def init_params(key, num_sensors):
    k1, k2, k3, k4 = jax.random.split(key, 4)
    lim1 = 1.0 / float(num_sensors) ** 0.5
    lim2 = 1.0 / float(H1) ** 0.5
    w1 = jax.random.uniform(k1, (H1, num_sensors), jnp.float32, -lim1, lim1)
    b1 = jax.random.uniform(k2, (H1,), jnp.float32, -lim1, lim1)
    w2 = jax.random.uniform(k3, (1, H1), jnp.float32, -lim2, lim2)
    b2 = jax.random.uniform(k4, (1,), jnp.float32, -lim2, lim2)
    return {"w1": w1, "b1": b1, "w2": w2, "b2": b2}


def prepare_params(params):
    """One-time weight fold: transpose + zero-pad hidden dim to 128 lanes."""
    w1, b1, w2, b2 = params["w1"], params["b1"], params["w2"], params["b2"]
    S = w1.shape[1]
    w1t = jnp.zeros((S, H1_PAD), jnp.float32).at[:, :H1].set(w1.T)   # (S, 128)
    b1p = jnp.zeros((1, H1_PAD), jnp.float32).at[0, :H1].set(b1)     # (1, 128)
    w2v = jnp.zeros((1, H1_PAD), jnp.float32).at[0, :H1].set(w2[0])  # (1, 128)
    b2s = b2.reshape(1, 1).astype(jnp.float32)                       # (1, 1)
    return {"w1t": w1t, "b1p": b1p, "w2v": w2v, "b2s": b2s}


# ---------------------------------------------------------------------------
# Forward: tile the (unpadded) batch, run the fused kernel
# ---------------------------------------------------------------------------
def linear_probe_forward(prepped, x):
    B, S = x.shape
    x = x.astype(jnp.float32)
    # batch tile: multiple of 8 sublanes, capped at 512 rows per grid step
    TB = min(((B + 7) // 8) * 8, 512)
    grid = (pl.cdiv(B, TB),)

    out = pl.pallas_call(
        linear_probe_kernel,
        out_shape=jax.ShapeDtypeStruct((B, 1), jnp.float32),
        grid_spec=pltpu.PrefetchScalarGridSpec(
            num_scalar_prefetch=0,
            grid=grid,
            in_specs=[
                pl.BlockSpec((TB, S), lambda i: (i, 0)),         # x batch tile
                pl.BlockSpec((S, H1_PAD), lambda i: (0, 0)),     # W1^T (resident)
                pl.BlockSpec((1, H1_PAD), lambda i: (0, 0)),     # b1   (resident)
                pl.BlockSpec((1, H1_PAD), lambda i: (0, 0)),     # w2 row (resident)
                pl.BlockSpec((1, 1), lambda i: (0, 0)),          # b2   (resident)
            ],
            out_specs=pl.BlockSpec((TB, 1), lambda i: (i, 0)),   # real (B, 1) output
        ),
        compiler_params=pltpu.CompilerParams(
            dimension_semantics=("parallel",)),                  # batch tiles independent
    )(x, prepped["w1t"], prepped["b1p"], prepped["w2v"], prepped["b2s"])
    return out


if __name__ == "__main__":
    # Match kernel & reference matmul precision (full f32) for the parity check.
    jax.config.update("jax_default_matmul_precision", "highest")

    # Small deterministic example: batch=2, num_sensors=16
    num_sensors = 16
    batch = 2

    key = jax.random.PRNGKey(0)
    pkey, xkey = jax.random.split(key)
    params = init_params(pkey, num_sensors)
    prepped = prepare_params(params)
    x = jax.random.normal(xkey, (batch, num_sensors), jnp.float32)

    out = jax.jit(linear_probe_forward)(prepped, x)
    out = jax.block_until_ready(out)
    assert out.shape == (batch, 1)

    # Pure-JAX reference check (same math as the PyTorch forward)
    ref = x @ params["w1"].T + params["b1"]
    ref = ref @ params["w2"].T + params["b2"]
    assert jnp.allclose(out, ref, rtol=1e-4, atol=1e-4)

    # NOTE: self.dropout is stored but never applied in LinearProbe.forward,
    # so there is nothing to translate for it.
    print("KERNEL_OK")
</pallas_src>

<mosaic_0001>
module attributes {stable_mosaic.version = 11 : i64} {
  func.func @linear_probe_kernel(%arg0: i32, %arg1: memref<8x16xf32, #tpu.memory_space<vmem>>, %arg2: memref<16x128xf32, #tpu.memory_space<vmem>>, %arg3: memref<1x128xf32, #tpu.memory_space<vmem>>, %arg4: memref<1x128xf32, #tpu.memory_space<vmem>>, %arg5: memref<1x1xf32, #tpu.memory_space<vmem>>, %arg6: memref<8x1xf32, #tpu.memory_space<vmem>>) attributes {dimension_semantics = [#tpu.dimension_semantics<parallel>], iteration_bounds = array<i64: 1>, scalar_prefetch = 0 : i64, scratch_operands = 0 : i64, tpu.core_type = #tpu.core_type<tc>, window_params = [{transform_indices = @transform_0, window_bounds = array<i64: 8, 16>}, {pipeline_mode = #tpu.pipeline_mode<synchronous>, transform_indices = @transform_1, window_bounds = array<i64: 16, 128>}, {pipeline_mode = #tpu.pipeline_mode<synchronous>, transform_indices = @transform_2, window_bounds = array<i64: 1, 128>}, {pipeline_mode = #tpu.pipeline_mode<synchronous>, transform_indices = @transform_3, window_bounds = array<i64: 1, 128>}, {pipeline_mode = #tpu.pipeline_mode<synchronous>, transform_indices = @transform_4, window_bounds = array<i64: 1, 1>}, {transform_indices = @transform_5, window_bounds = array<i64: 8, 1>}]} {
    %c0 = arith.constant 0 : index
    %c0_0 = arith.constant 0 : index
    %0 = vector.load %arg1[%c0, %c0_0] : memref<8x16xf32, #tpu.memory_space<vmem>>, vector<8x16xf32>
    %c0_1 = arith.constant 0 : index
    %c0_2 = arith.constant 0 : index
    %1 = vector.load %arg2[%c0_1, %c0_2] : memref<16x128xf32, #tpu.memory_space<vmem>>, vector<16x128xf32>
    %cst = arith.constant dense<0.000000e+00> : vector<8x128xf32>
    %2 = tpu.matmul %0, %1, %cst {dimension_numbers = #tpu.dot_dimension_numbers<[1], [0], [0], [1], [0, 0, 1, 1], [], []>, precision = #tpu.contract_precision<fp32>} : vector<8x16xf32>, vector<16x128xf32>, vector<8x128xf32> -> vector<8x128xf32>
    %c0_3 = arith.constant 0 : index
    %c0_4 = arith.constant 0 : index
    %3 = vector.load %arg3[%c0_3, %c0_4] : memref<1x128xf32, #tpu.memory_space<vmem>>, vector<1x128xf32>
    %4 = vector.broadcast %3 : vector<1x128xf32> to vector<8x128xf32>
    %5 = arith.addf %2, %4 : vector<8x128xf32>
    %c0_5 = arith.constant 0 : index
    %c0_6 = arith.constant 0 : index
    %6 = vector.load %arg4[%c0_5, %c0_6] : memref<1x128xf32, #tpu.memory_space<vmem>>, vector<1x128xf32>
    %7 = vector.broadcast %6 : vector<1x128xf32> to vector<8x128xf32>
    %8 = arith.mulf %5, %7 : vector<8x128xf32>
    %cst_7 = arith.constant dense<0.000000e+00> : vector<8xf32>
    %9 = vector.multi_reduction <add>, %8, %cst_7 [1] : vector<8x128xf32> to vector<8xf32>
    %10 = vector.shape_cast %9 : vector<8xf32> to vector<8x1xf32>
    %c0_8 = arith.constant 0 : index
    %c0_9 = arith.constant 0 : index
    %11 = vector.load %arg5[%c0_8, %c0_9] : memref<1x1xf32, #tpu.memory_space<vmem>>, vector<1x1xf32>
    %12 = vector.broadcast %11 : vector<1x1xf32> to vector<8x1xf32>
    %13 = arith.addf %10, %12 : vector<8x1xf32>
    %c0_10 = arith.constant 0 : index
    %c0_11 = arith.constant 0 : index
    %14 = vector.load %arg6[%c0_10, %c0_11] : memref<8x1xf32, #tpu.memory_space<vmem>>, vector<8x1xf32>
    tpu.vector_store %arg6[%c0_10, %c0_11], %13 {strides = array<i32>} : memref<8x1xf32, #tpu.memory_space<vmem>>, vector<8x1xf32>,
    return
  }
  func.func @transform_0(%arg0: i32) -> (i32, i32) {
    %c0_i32 = arith.constant 0 : i32
    %c0_i32_0 = arith.constant 0 : i32
    return %arg0, %c0_i32 : i32, i32
  }
  func.func @transform_1(%arg0: i32) -> (i32, i32) {
    %c0_i32 = arith.constant 0 : i32
    %c0_i32_0 = arith.constant 0 : i32
    %c0_i32_1 = arith.constant 0 : i32
    return %c0_i32, %c0_i32_0 : i32, i32
  }
  func.func @transform_2(%arg0: i32) -> (i32, i32) {
    %c0_i32 = arith.constant 0 : i32
    %c0_i32_0 = arith.constant 0 : i32
    %c0_i32_1 = arith.constant 0 : i32
    return %c0_i32, %c0_i32_0 : i32, i32
  }
  func.func @transform_3(%arg0: i32) -> (i32, i32) {
    %c0_i32 = arith.constant 0 : i32
    %c0_i32_0 = arith.constant 0 : i32
    %c0_i32_1 = arith.constant 0 : i32
    return %c0_i32, %c0_i32_0 : i32, i32
  }
  func.func @transform_4(%arg0: i32) -> (i32, i32) {
    %c0_i32 = arith.constant 0 : i32
    %c0_i32_0 = arith.constant 0 : i32
    %c0_i32_1 = arith.constant 0 : i32
    return %c0_i32, %c0_i32_0 : i32, i32
  }
  func.func @transform_5(%arg0: i32) -> (i32, i32) {
    %c0_i32 = arith.constant 0 : i32
    %c0_i32_0 = arith.constant 0 : i32
    return %arg0, %c0_i32 : i32, i32
  }
}

</mosaic_0001>

<bundles_post_ra>
// kernel: linear_probe_forward.1
= control target key start
LH: loop header
LB: loop body
LE: loop exit
PB: predicated region body
PF: predicated region fallthrough
CT: control target
= control target key end

     0   :  { %s390_s0 = inlined_call_operand.vmem [shape: f32[2,16], index: 0, kind: input, shape index: {}]   ;;  %s391_s1 = inlined_call_operand.hbm [shape: f32[16,128], index: 1, kind: input, shape index: {}]   ;;  %s392_s2 = inlined_call_operand.vmem [shape: f32[1,128], index: 2, kind: input, shape index: {}]   ;;  %s393_s3 = inlined_call_operand.hbm [shape: f32[1,128], index: 3, kind: input, shape index: {}]   ;;  %s394_s4 = inlined_call_operand.<no memory space> [shape: f32[1,1], index: 4, kind: input, shape index: {}]   ;;  %s395_s5 = inlined_call_operand.vmem [shape: f32[2,1], index: 5, kind: output, shape index: {}]  }
   0x1   :  { %v10_v0 = vstv %s394_s4 }
   0x2   :  { %11 = vst [vmem:[#allocation2] sm:$0x1] %v10_v0 }
   0x3   :  { %12 = vsyncpa [#allocation4], 0  ;;  %s20_s22 = sshll.u32 %s391_s1, 4  ;;  %s21_s22 = int_to_ptr.hbm [resolvable:$true] %s20_s22 }
   0x4   :  { %13 = vsyncpa [#allocation6], 0  ;;  %s338_s23 = smov [#allocation3]   ;;  %s36_s27 = sshll.u32 %s393_s3, 4  ;;  %s37_s27 = int_to_ptr.hbm [resolvable:$true] %s36_s27 }
   0x5   :  { %s22_s24 = sshll.u32 %s338_s23, 4  ;;  %s339_s28 = smov 128   ;;  %s23_s24 = int_to_ptr.vmem [resolvable:$true] %s22_s24 }
   0x6   :  { %s340_s29 = smov 8   ;;  %s341_s4 = smov [#allocation5]  }
   0x7   :  { %28 = dma.hbm_to_vmem [thread:$0]  %s21_s22, 256, %s23_s24, [#allocation4], %s339_s28, %s339_s28, %s340_s29  }
   0x8   :  { %s38_s30 = sshll.u32 %s341_s4, 4  ;;  %s39_s30 = int_to_ptr.vmem [resolvable:$true] %s38_s30 }
   0x9   :  { %41 = dma.hbm_to_vmem [thread:$0]  %s37_s27, 16, %s39_s30, [#allocation6]  }
   0xa   :  { %334 = dma.done.wait [#allocation4], 256  }
   0xb   :  { %335 = vsyncadd [#allocation4], 4294967040 }
   0xc   :  { %336 = dma.done.wait [#allocation6], 16  }
   0xd   :  { %337 = vsyncadd [#allocation6], 4294967280  ;;  %vm59_vm0 = vcmask 130048   ;;  %v54_v1 = vld [vmem:[#allocation3 + $0x8] sm:$0xff]  ;;  %v53_v2 = vld [vmem:[#allocation3] sm:$0xff]  ;;  %vm234_vm1 = vcmask 7168  }
   0xe   :  { %v52_v3 = vld [vmem:[%s390_s0] sm:$0xff]  ;;  %v77_v4 = vand.u32 4294901760, %v54_v1  ;;  %v79_v5 = vand.u32 4294901760, %v53_v2  ;;  %v284_v31 = vld [vmem:[#allocation5] ss:$0 sm:$0xff] }
   0xf   :  { %v61_v6 = vsel %vm59_vm0, %v52_v3, 0  ;;  %v283_v20 = vld [vmem:[%s392_s2] ss:$0 sm:$0xff] }
  0x10   :  { %v81_v7 = vand.u32 4294901760, %v61_v6  ;;  %v105_v8 = vsub.f32 %v54_v1, %v77_v4  ;;  %78 = vmatpush.msra.mxu0 %v77_v4  ;;  %v111_v9 = vsub.f32 %v53_v2, %v79_v5  ;;  %162 = vmatpush.msra.mxu3 %v77_v4  ;;  %v285_v35 = vld [vmem:[#allocation2] ss:$0 sm:$0xff] }
  0x12   :  { %v82_v10 = vsub.f32 %v61_v6, %v81_v7  ;;  %137 = vmatpush.msra.mxu2 %v105_v8  ;;  %80 = vmatpush.msra.mxu0 %v79_v5  ;;  %v106_v11 = vand.u32 4294901760, %v105_v8  ;;  %v112_v12 = vand.u32 4294901760, %v111_v9 }
  0x13   :  { %164 = vmatpush.msra.mxu3 %v79_v5 }
  0x14   :  { %v83_v13 = vand.u32 4294901760, %v82_v10  ;;  %140 = vmatpush.msra.mxu2 %v111_v9  ;;  %v107_v14 = vsub.f32 %v105_v8, %v106_v11  ;;  %189 = vmatpush.msrb.mxu0 %v106_v11  ;;  %v113_v15 = vsub.f32 %v111_v9, %v112_v12 }
  0x15   :  { %143 = vmatmul.f32.vlgmr.msra.gmra.mxu2 %v82_v10 }
  0x16   :  { %v84_v16 = vsub.f32 %v82_v10, %v83_v13  ;;  %168 = vmatmul.f32.vlgmr.msra.gmra.mxu3 %v83_v13  ;;  %v108_v17 = vand.u32 4294901760, %v107_v14  ;;  %v114_v18 = vand.u32 4294901760, %v113_v15  ;;  %193 = vmatpush.msrb.mxu0 %v112_v12 }
  0x18   :  { %v85_v19 = vand.u32 4294901760, %v84_v16  ;;  %109 = vmatpush.msra.mxu1 %v108_v17 }
  0x1a   :  { %86 = vmatmul.f32.vlgmr.msra.gmra.mxu0 %v85_v19  ;;  %115 = vmatpush.msra.mxu1 %v114_v18 }
  0x1b   :  { %117 = vmatmul.f32.vlgmr.msra.gmra.mxu1 %v81_v7 }
  0x1c   :  { %214 = vmatpush.msrb.mxu1 %v77_v4 }
  0x1e   :  { %216 = vmatpush.msrb.mxu1 %v79_v5 }
  0x22   :  { %195 = vmatmul.f32.vlgmr.msrb.gmra.mxu0 %v81_v7 }
  0x23   :  { %218 = vmatmul.f32.vlgmr.msrb.gmra.mxu1 %v81_v7 }
  0x97   :  { %v87_v21 = vpop.f32.mrf.mxu0 }
  0x98   :  { %v88_v22 = vadd.f32 %v283_v20, %v87_v21  ;;  %v118_v23 = vpop.f32.mrf.mxu1  ;;  %v144_v24 = vpop.f32.mrf.mxu2 }
  0x99   :  { %v169_v26 = vpop.f32.mrf.mxu3 }
  0x9a   :  { %v119_v25 = vadd.f32 %v118_v23, %v88_v22 }
  0x9c   :  { %v145_v27 = vadd.f32 %v144_v24, %v119_v25 }
  0x9e   :  { %v170_v28 = vadd.f32 %v169_v26, %v145_v27 }
  0x9f   :  { %v196_v29 = vpop.f32.mrf.mxu0 }
  0xa0   :  { %v197_v30 = vadd.f32 %v196_v29, %v170_v28  ;;  %v219_v32 = vpop.f32.mrf.mxu1 }
  0xa2   :  { %v220_v33 = vadd.f32 %v219_v32, %v197_v30 }
  0xa4   :  { %v226_v34 = vmul.f32 %v284_v31, %v220_v33 }
  0xa6   :  { %227 = vadd.xlane.f32.xlu0 %v226_v34 }
 0x119   :  { %v228_v36 = vpop.xlane.xlu0 %227 }
 0x11a   :  { %v233_v37 = vadd.f32 %v285_v35, %v228_v36 }
 0x11c   :  { %235 = vst.msk [vmem:[#allocation7] sm:$0xff] %vm234_vm1, %v233_v37 }
 0x123   :  { %v254_v38 = vld [vmem:[#allocation7] sm:$0x3] }
 0x124   :  { %255 = vst [vmem:[%s395_s5] sm:$0x3] %v254_v38 }
 0x125   :  { %273 = vsyncpa [#allocation4], 1 }
 0x126   :  { %274 = vsyncpa [#allocation6], 1 }

</bundles_post_ra>
